<compile_context>
chip_gen: v5e
topology: v5e:2x2
jax: 0.10.0
libtpu: 0.0.40
codegen_flags: <defaults>
</compile_context>

<pallas_src>
import functools

import jax
import jax.numpy as jnp
from jax.experimental import pallas as pl
from jax.experimental.pallas import tpu as pltpu

F32 = jnp.float32
BF16 = jnp.bfloat16


def _ln_f32(x, g, b, eps=1e-5):
    """LayerNorm over the last dim, math in f32."""
    x = x.astype(F32)
    mu = jnp.mean(x, axis=-1, keepdims=True)
    xc = x - mu
    var = jnp.mean(xc * xc, axis=-1, keepdims=True)
    return xc * jax.lax.rsqrt(var + eps) * g.astype(F32) + b.astype(F32)


# ----------------- prologue: patch embed + (cls,pos) + ln_pre ---------------

def _embed_kernel(p_ref, w_ref, pos_ref, g_ref, b_ref, x0_ref):
    # conv1 with stride == kernel == patch extraction (wrapper) + matmul (here)
    emb = jnp.dot(p_ref[0], w_ref[...], preferred_element_type=F32)  # [S_pad, W]
    x0_ref[0] = _ln_f32(emb + pos_ref[...], g_ref[...], b_ref[...])


# ----------------- fused transformer stack + CLS head -----------------------

def _vit_kernel(S_real, heads,
                x0_ref,
                ln1g_ref, ln1b_ref, qkvw_ref, qkvb_ref, ow_ref, ob_ref,
                ln2g_ref, ln2b_ref, fcw_ref, fcb_ref, pjw_ref, pjb_ref,
                lnpg_ref, lnpb_ref, proj_ref,
                o_ref, x_sc):
    layer = pl.program_id(1)
    S_pad, W = x_sc.shape
    Dh = W // heads
    scale = 1.0 / (Dh ** 0.5)

    # load the (already ln_pre'd) embeddings once per image
    @pl.when(layer == 0)
    def _init():
        x_sc[...] = x0_ref[0]

    x = x_sc[...]                                   # [S_pad, W] f32, VMEM resident

    # key-padding additive mask generated in-kernel (VPU filler, no DMA)
    col = jax.lax.broadcasted_iota(jnp.int32, (S_pad, S_pad), 1)
    bias = jnp.where(col < S_real, 0.0, -1e30).astype(F32)

    # ---- multi-head self-attention (pre-LN), residual folded in ------------
    xn = _ln_f32(x, ln1g_ref[0], ln1b_ref[0]).astype(BF16)
    # single lane-dense fused QKV projection
    qkv = jnp.dot(xn, qkvw_ref[0], preferred_element_type=F32) + qkvb_ref[0]  # [S_pad, 3W]

    ctx_parts = []
    # TODO(synk): with realistic head counts (>=8) switch this static unroll to
    # lax.fori_loop(..., unroll=True) to bound live ranges / avoid vreg spills.
    for h in range(heads):
        q = qkv[:, h * Dh:(h + 1) * Dh] * scale
        k = qkv[:, W + h * Dh: W + (h + 1) * Dh]
        v = qkv[:, 2 * W + h * Dh: 2 * W + (h + 1) * Dh]
        s = jax.lax.dot_general(q.astype(BF16), k.astype(BF16),
                                (((1,), (1,)), ((), ())),
                                preferred_element_type=F32)           # [S_pad, S_pad]
        s = s + bias
        s = s - jnp.max(s, axis=-1, keepdims=True)
        p = jnp.exp(s)
        p = p * pl.reciprocal(jnp.sum(p, axis=-1, keepdims=True), approx=True)
        ctx_parts.append(jnp.dot(p.astype(BF16), v.astype(BF16),
                                 preferred_element_type=F32))         # [S_pad, Dh]
    ctx = jnp.concatenate(ctx_parts, axis=-1).astype(BF16)            # [S_pad, W]
    # single lane-dense output projection (out-proj bias folded in)
    attn = jnp.dot(ctx, ow_ref[0], preferred_element_type=F32) + ob_ref[0]
    x = x + attn

    # ---- MLP (fc -> QuickGELU -> proj), residual folded in -----------------
    xn2 = _ln_f32(x, ln2g_ref[0], ln2b_ref[0]).astype(BF16)
    h1 = jnp.dot(xn2, fcw_ref[0], preferred_element_type=F32) + fcb_ref[0]
    h1 = h1 * jax.nn.sigmoid(1.702 * h1)                              # QuickGELU, f32
    h2 = jnp.dot(h1.astype(BF16), pjw_ref[0], preferred_element_type=F32) + pjb_ref[0]
    x = x + h2
    x_sc[...] = x                                                     # carry to next layer

    # ---- CLS-only ln_post + projection head : last layer step only ---------
    @pl.when(layer == pl.num_programs(1) - 1)
    def _head():
        cls = x[0:1, :]                                               # CLS row slice
        cls = _ln_f32(cls, lnpg_ref[...], lnpb_ref[...]).astype(BF16)
        o_ref[0] = jnp.dot(cls, proj_ref[...],
                           preferred_element_type=F32).astype(o_ref.dtype)


# ------------------------------ model forward -------------------------------

def clip_image_extractor_forward(x_nchw, params):
    """Matches ClipImageExtractor.forward:
       hidden = visual(x); hidden = ln_post(hidden) @ proj; return hidden[:, 0, :]
       (CLS sliced before ln_post/proj -- identical since both are per-token.)"""
    B, C, H, Wimg = x_nchw.shape
    P = params["patch"]
    gh, gw = H // P, Wimg // P
    Np = gh * gw
    S = Np + 1
    S_pad = ((S + 7) // 8) * 8                       # token axis on the vreg grid
    width = params["conv_w"].shape[0]
    heads = params["heads"]
    L = len(params["blocks"])
    FF = params["blocks"][0]["fc_w"].shape[0]
    E = params["proj"].shape[1]
    E_pad = ((E + 127) // 128) * 128                 # lane-dense output store
    CPP = C * P * P

    # ---- host-side layout prep (one-time, trace-level glue) ----------------
    patches = (x_nchw.reshape(B, C, gh, P, gw, P)
               .transpose(0, 2, 4, 1, 3, 5)
               .reshape(B, Np, CPP))
    patches_pad = jnp.zeros((B, S_pad, CPP), BF16).at[:, 1:1 + Np, :].set(
        patches.astype(BF16))                        # row 0 = CLS slot, tail = pad

    conv_w = params["conv_w"].reshape(width, CPP).T.astype(BF16)       # [CPP, W]

    pos = params["pos_embedding"].astype(F32)
    pos = pos.at[0].add(params["class_embedding"].astype(F32))         # cls folded in
    posbias = jnp.zeros((S_pad, width), F32).at[:S, :].set(pos)

    ln_pre_g = params["ln_pre_g"].reshape(1, width).astype(F32)
    ln_pre_b = params["ln_pre_b"].reshape(1, width).astype(F32)
    ln_post_g = params["ln_post_g"].reshape(1, width).astype(F32)
    ln_post_b = params["ln_post_b"].reshape(1, width).astype(F32)
    proj_pad = jnp.zeros((width, E_pad), BF16).at[:, :E].set(
        params["proj"].astype(BF16))                                   # [W, E_pad]

    def stack(name):
        return jnp.stack([blk[name] for blk in params["blocks"]])

    ln1_g = stack("ln1_g").reshape(L, 1, width).astype(F32)
    ln1_b = stack("ln1_b").reshape(L, 1, width).astype(F32)
    ln2_g = stack("ln2_g").reshape(L, 1, width).astype(F32)
    ln2_b = stack("ln2_b").reshape(L, 1, width).astype(F32)

    qkv_w = stack("in_proj_w").transpose(0, 2, 1).astype(BF16)         # [L, W, 3W]
    qkv_b = stack("in_proj_b").reshape(L, 1, 3 * width).astype(F32)
    ow = stack("out_proj_w").transpose(0, 2, 1).astype(BF16)           # [L, W, W]
    ob = stack("out_proj_b").reshape(L, 1, width).astype(F32)
    fc_w = stack("fc_w").transpose(0, 2, 1).astype(BF16)               # [L, W, FF]
    fc_b = stack("fc_b").reshape(L, 1, FF).astype(F32)
    pj_w = stack("proj_w").transpose(0, 2, 1).astype(BF16)             # [L, FF, W]
    pj_b = stack("proj_b").reshape(L, 1, width).astype(F32)

    # -------- prologue: patch-embed + (cls,pos) bias + ln_pre ---------------
    x0 = pl.pallas_call(
        _embed_kernel,
        out_shape=jax.ShapeDtypeStruct((B, S_pad, width), F32),
        grid=(B,),
        in_specs=[
            pl.BlockSpec((1, S_pad, CPP), lambda b: (b, 0, 0)),
            pl.BlockSpec((CPP, width), lambda b: (0, 0)),
            pl.BlockSpec((S_pad, width), lambda b: (0, 0)),
            pl.BlockSpec((1, width), lambda b: (0, 0)),
            pl.BlockSpec((1, width), lambda b: (0, 0)),
        ],
        out_specs=pl.BlockSpec((1, S_pad, width), lambda b: (b, 0, 0)),
        compiler_params=pltpu.CompilerParams(
            dimension_semantics=("parallel",)),
    )(patches_pad, conv_w, posbias, ln_pre_g, ln_pre_b)

    # -------- fused transformer stack + CLS head -----------------------------
    lw3 = lambda b, l: (l, 0, 0)      # per-layer stacked weights
    cst2 = lambda b, l: (0, 0)        # layer/batch-invariant head params

    out = pl.pallas_call(
        functools.partial(_vit_kernel, S, heads),
        out_shape=jax.ShapeDtypeStruct((B, 1, E_pad), F32),
        grid=(B, L),
        in_specs=[
            pl.BlockSpec((1, S_pad, width), lambda b, l: (b, 0, 0)),   # x0 (per image)
            pl.BlockSpec((1, 1, width), lw3),           # ln1 gamma
            pl.BlockSpec((1, 1, width), lw3),           # ln1 beta
            pl.BlockSpec((1, width, 3 * width), lw3),   # fused qkv weight
            pl.BlockSpec((1, 1, 3 * width), lw3),       # fused qkv bias
            pl.BlockSpec((1, width, width), lw3),       # out-proj weight
            pl.BlockSpec((1, 1, width), lw3),           # out-proj bias
            pl.BlockSpec((1, 1, width), lw3),           # ln2 gamma
            pl.BlockSpec((1, 1, width), lw3),           # ln2 beta
            pl.BlockSpec((1, width, FF), lw3),          # mlp fc weight
            pl.BlockSpec((1, 1, FF), lw3),              # mlp fc bias
            pl.BlockSpec((1, FF, width), lw3),          # mlp proj weight
            pl.BlockSpec((1, 1, width), lw3),           # mlp proj bias
            pl.BlockSpec((1, width), cst2),             # ln_post gamma
            pl.BlockSpec((1, width), cst2),             # ln_post beta
            pl.BlockSpec((width, E_pad), cst2),         # visual projection (lane-padded)
        ],
        out_specs=pl.BlockSpec((1, 1, E_pad), lambda b, l: (b, 0, 0)),
        scratch_shapes=[pltpu.VMEM((S_pad, width), F32)],   # resident activations
        compiler_params=pltpu.CompilerParams(
            dimension_semantics=("parallel", "arbitrary"),   # batch x layer
            vmem_limit_bytes=32 * 1024 * 1024),
    )(x0, ln1_g, ln1_b, qkv_w, qkv_b, ow, ob, ln2_g, ln2_b,
      fc_w, fc_b, pj_w, pj_b, ln_post_g, ln_post_b, proj_pad)

    return out.reshape(B, E_pad)[:, :E]                      # [B, embed_dim]


# ----------------------------- deterministic init ---------------------------

def init_params(key, *, C=3, patch=8, grid=2, width=32, heads=2, layers=2,
                embed_dim=16):
    S = grid * grid + 1
    scale = 0.02
    keys = jax.random.split(key, 4 + layers)
    params = dict(
        patch=patch,
        heads=heads,
        conv_w=scale * jax.random.normal(keys[0], (width, C, patch, patch), F32),
        class_embedding=scale * jax.random.normal(keys[1], (width,), F32),
        pos_embedding=scale * jax.random.normal(keys[2], (S, width), F32),
        ln_pre_g=jnp.ones((width,), F32),
        ln_pre_b=jnp.zeros((width,), F32),
        ln_post_g=jnp.ones((width,), F32),
        ln_post_b=jnp.zeros((width,), F32),
        proj=scale * jax.random.normal(keys[3], (width, embed_dim), F32),
        blocks=[],
    )
    for l in range(layers):
        bk = jax.random.split(keys[4 + l], 4)
        params["blocks"].append(dict(
            ln1_g=jnp.ones((width,), F32),
            ln1_b=jnp.zeros((width,), F32),
            ln2_g=jnp.ones((width,), F32),
            ln2_b=jnp.zeros((width,), F32),
            in_proj_w=scale * jax.random.normal(bk[0], (3 * width, width), F32),
            in_proj_b=jnp.zeros((3 * width,), F32),
            out_proj_w=scale * jax.random.normal(bk[1], (width, width), F32),
            out_proj_b=jnp.zeros((width,), F32),
            fc_w=scale * jax.random.normal(bk[2], (4 * width, width), F32),
            fc_b=jnp.zeros((4 * width,), F32),
            proj_w=scale * jax.random.normal(bk[3], (width, 4 * width), F32),
            proj_b=jnp.zeros((width,), F32),
        ))
    return params


if __name__ == "__main__":
    key = jax.random.PRNGKey(0)
    kx, kp = jax.random.split(key)
    # layout: NCHW input, like the PyTorch module ([B, 3, 16, 16]).
    x = jax.random.normal(kx, (2, 3, 16, 16), F32)
    params = init_params(kp)

    out = clip_image_extractor_forward(x, params)
    out = jax.block_until_ready(out)
    assert out.shape == (2, 16), out.shape
    assert out.dtype == F32
    assert bool(jnp.all(jnp.isfinite(out)))
    print("KERNEL_OK")
</pallas_src>

<mosaic_0001>
module attributes {stable_mosaic.version = 11 : i64} {
  func.func @_embed_kernel(%arg0: i32, %arg1: memref<1x8x192xbf16, #tpu.memory_space<vmem>>, %arg2: memref<192x32xbf16, #tpu.memory_space<vmem>>, %arg3: memref<8x32xf32, #tpu.memory_space<vmem>>, %arg4: memref<1x32xf32, #tpu.memory_space<vmem>>, %arg5: memref<1x32xf32, #tpu.memory_space<vmem>>, %arg6: memref<1x8x32xf32, #tpu.memory_space<vmem>>) attributes {dimension_semantics = [#tpu.dimension_semantics<parallel>], iteration_bounds = array<i64: 2>, scalar_prefetch = 0 : i64, scratch_operands = 0 : i64, tpu.core_type = #tpu.core_type<tc>, window_params = [{transform_indices = @transform_0, window_bounds = array<i64: 1, 8, 192>}, {pipeline_mode = #tpu.pipeline_mode<synchronous>, transform_indices = @transform_1, window_bounds = array<i64: 192, 32>}, {pipeline_mode = #tpu.pipeline_mode<synchronous>, transform_indices = @transform_2, window_bounds = array<i64: 8, 32>}, {pipeline_mode = #tpu.pipeline_mode<synchronous>, transform_indices = @transform_3, window_bounds = array<i64: 1, 32>}, {pipeline_mode = #tpu.pipeline_mode<synchronous>, transform_indices = @transform_4, window_bounds = array<i64: 1, 32>}, {transform_indices = @transform_5, window_bounds = array<i64: 1, 8, 32>}]} {
    %c0 = arith.constant 0 : index
    %c0_0 = arith.constant 0 : index
    %c0_1 = arith.constant 0 : index
    %0 = vector.load %arg1[%c0, %c0_0, %c0_1] : memref<1x8x192xbf16, #tpu.memory_space<vmem>>, vector<1x8x192xbf16>
    %1 = vector.shape_cast %0 : vector<1x8x192xbf16> to vector<8x192xbf16>
    %c0_2 = arith.constant 0 : index
    %c0_3 = arith.constant 0 : index
    %2 = vector.load %arg2[%c0_2, %c0_3] : memref<192x32xbf16, #tpu.memory_space<vmem>>, vector<192x32xbf16>
    %cst = arith.constant dense<0.000000e+00> : vector<8x32xf32>
    %3 = tpu.matmul %1, %2, %cst {dimension_numbers = #tpu.dot_dimension_numbers<[1], [0], [0], [1], [0, 0, 1, 1], [], []>} : vector<8x192xbf16>, vector<192x32xbf16>, vector<8x32xf32> -> vector<8x32xf32>
    %c0_4 = arith.constant 0 : index
    %c0_5 = arith.constant 0 : index
    %4 = vector.load %arg3[%c0_4, %c0_5] : memref<8x32xf32, #tpu.memory_space<vmem>>, vector<8x32xf32>
    %5 = arith.addf %3, %4 : vector<8x32xf32>
    %c0_6 = arith.constant 0 : index
    %c0_7 = arith.constant 0 : index
    %6 = vector.load %arg4[%c0_6, %c0_7] : memref<1x32xf32, #tpu.memory_space<vmem>>, vector<1x32xf32>
    %c0_8 = arith.constant 0 : index
    %c0_9 = arith.constant 0 : index
    %7 = vector.load %arg5[%c0_8, %c0_9] : memref<1x32xf32, #tpu.memory_space<vmem>>, vector<1x32xf32>
    %cst_10 = arith.constant dense<0.000000e+00> : vector<8xf32>
    %8 = vector.multi_reduction <add>, %5, %cst_10 [1] : vector<8x32xf32> to vector<8xf32>
    %9 = vector.shape_cast %8 : vector<8xf32> to vector<8x1xf32>
    %cst_11 = arith.constant 3.200000e+01 : f32
    %10 = vector.broadcast %cst_11 : f32 to vector<8x1xf32>
    %11 = arith.divf %9, %10 : vector<8x1xf32>
    %12 = vector.broadcast %11 : vector<8x1xf32> to vector<8x32xf32>
    %13 = arith.subf %5, %12 : vector<8x32xf32>
    %14 = arith.mulf %13, %13 : vector<8x32xf32>
    %cst_12 = arith.constant dense<0.000000e+00> : vector<8xf32>
    %15 = vector.multi_reduction <add>, %14, %cst_12 [1] : vector<8x32xf32> to vector<8xf32>
    %16 = vector.shape_cast %15 : vector<8xf32> to vector<8x1xf32>
    %cst_13 = arith.constant 3.200000e+01 : f32
    %17 = vector.broadcast %cst_13 : f32 to vector<8x1xf32>
    %18 = arith.divf %16, %17 : vector<8x1xf32>
    %cst_14 = arith.constant 9.99999974E-6 : f32
    %19 = vector.broadcast %cst_14 : f32 to vector<8x1xf32>
    %20 = arith.addf %18, %19 : vector<8x1xf32>
    %21 = math.rsqrt %20 : vector<8x1xf32>
    %22 = vector.broadcast %21 : vector<8x1xf32> to vector<8x32xf32>
    %23 = arith.mulf %13, %22 : vector<8x32xf32>
    %24 = vector.broadcast %6 : vector<1x32xf32> to vector<8x32xf32>
    %25 = arith.mulf %23, %24 : vector<8x32xf32>
    %26 = vector.broadcast %7 : vector<1x32xf32> to vector<8x32xf32>
    %27 = arith.addf %25, %26 : vector<8x32xf32>
    %c0_15 = arith.constant 0 : index
    %c0_16 = arith.constant 0 : index
    %c0_17 = arith.constant 0 : index
    %28 = vector.load %arg6[%c0_15, %c0_16, %c0_17] : memref<1x8x32xf32, #tpu.memory_space<vmem>>, vector<1x8x32xf32>
    %29 = vector.shape_cast %28 : vector<1x8x32xf32> to vector<8x32xf32>
    %30 = vector.shape_cast %27 : vector<8x32xf32> to vector<1x8x32xf32>
    tpu.vector_store %arg6[%c0_15, %c0_16, %c0_17], %30 {strides = array<i32>} : memref<1x8x32xf32, #tpu.memory_space<vmem>>, vector<1x8x32xf32>,
    return
  }
  func.func @transform_0(%arg0: i32) -> (i32, i32, i32) {
    %c0_i32 = arith.constant 0 : i32
    %c0_i32_0 = arith.constant 0 : i32
    %c0_i32_1 = arith.constant 0 : i32
    return %arg0, %c0_i32, %c0_i32_0 : i32, i32, i32
  }
  func.func @transform_1(%arg0: i32) -> (i32, i32) {
    %c0_i32 = arith.constant 0 : i32
    %c0_i32_0 = arith.constant 0 : i32
    %c0_i32_1 = arith.constant 0 : i32
    return %c0_i32, %c0_i32_0 : i32, i32
  }
  func.func @transform_2(%arg0: i32) -> (i32, i32) {
    %c0_i32 = arith.constant 0 : i32
    %c0_i32_0 = arith.constant 0 : i32
    %c0_i32_1 = arith.constant 0 : i32
    return %c0_i32, %c0_i32_0 : i32, i32
  }
  func.func @transform_3(%arg0: i32) -> (i32, i32) {
    %c0_i32 = arith.constant 0 : i32
    %c0_i32_0 = arith.constant 0 : i32
    %c0_i32_1 = arith.constant 0 : i32
    return %c0_i32, %c0_i32_0 : i32, i32
  }
  func.func @transform_4(%arg0: i32) -> (i32, i32) {
    %c0_i32 = arith.constant 0 : i32
    %c0_i32_0 = arith.constant 0 : i32
    %c0_i32_1 = arith.constant 0 : i32
    return %c0_i32, %c0_i32_0 : i32, i32
  }
  func.func @transform_5(%arg0: i32) -> (i32, i32, i32) {
    %c0_i32 = arith.constant 0 : i32
    %c0_i32_0 = arith.constant 0 : i32
    %c0_i32_1 = arith.constant 0 : i32
    return %arg0, %c0_i32, %c0_i32_0 : i32, i32, i32
  }
}

</mosaic_0001>

<bundles_post_ra>
// kernel: tpu_custom_call.1
= control target key start
LH: loop header
LB: loop body
LE: loop exit
PB: predicated region body
PF: predicated region fallthrough
CT: control target
= control target key end

     0   :  { %10 = vsyncpa [#allocation3], 0  ;;  %s821_s0 = inlined_call_operand.vmem [shape: bf16[2,8,192], index: 0, kind: input, shape index: {}]   ;;  %s822_s1 = inlined_call_operand.vmem [shape: bf16[192,32], index: 1, kind: input, shape index: {}]   ;;  %s823_s2 = inlined_call_operand.vmem [shape: f32[8,32], index: 2, kind: input, shape index: {}]   ;;  %s824_s3 = inlined_call_operand.vmem [shape: f32[1,32], index: 3, kind: input, shape index: {}]   ;;  %s825_s4 = inlined_call_operand.vmem [shape: f32[1,32], index: 4, kind: input, shape index: {}]   ;;  %s826_s5 = inlined_call_operand.hbm [shape: f32[2,8,32], index: 5, kind: output, shape index: {}]  }
   0x1   :  { %12 = vsyncpa [#allocation3 + $0x1], 0  ;;  %s688_s18 = smov 0   ;;  %s690_s19 = smov 0  }
   0x2   :  { %s692_s20 = smov 0   ;;  %s694_s21 = smov 0  }
   0x3 LB: > { %s709_s22 = sadd.s32 4294967295, %s655_s21   ;;  %s474_s23 = sadd.s32 4294967294, %s655_s21   ;;  %s655_s21 = sphi %s694_s21, %s832_s21   ;;  %s651_s20 = sphi %s692_s20, %s831_s20   ;;  %s647_s19 = sphi %s690_s19, %s830_s19   ;;  %s643_s18 = sphi %s688_s18, %s829_s18  }
   0x4   : > { %s713_s24 = sadd.s32 1, %s655_s21   ;;  %s135_s25 = sadd.s32 1, %s651_s20 }
   0x5   : > { %s132_s26 = ssub.s32 %s655_s21, %s713_s24  ;;  %p145_p0 = scmp.ne.s32.totalorder %s651_s20, %s647_s19 }
   0x6   : > { %p133_p1 = scmp.eq.s32.totalorder %s132_s26, 0  ;;  %p146_p2 = scmp.eq.s32.totalorder %s709_s22, 1 }
   0x7   : > { %p151_p3 = scmp.ne.s32.totalorder %s647_s19, %s643_s18  ;;  %p152_p4 = scmp.eq.s32.totalorder %s474_s23, 1 }
   0x8   : > { %s724_s27 = scalar_select %p133_p1, %s651_s20, %s135_s25  }
   0x9   : > { %p726_p5 = por %p146_p2, %p145_p0  ;;  %p730_p6 = por %p152_p4, %p151_p3 }
   0xa   : > { %p477_p7 = scmp.ge.s32.totalorder %s655_s21, 1  ;;  %p190_p8 = scmp.lt.s32.totalorder %s655_s21, 3 }
   0xc   : > { %p191_p9 = pnand %p477_p7, %p190_p8 }
   0xd   : > { %p218_p10 = scmp.lt.s32.totalorder (!%p191_p9), %s709_s22, 1  ;;  %s215_s26 = sand.u32 (!%p191_p9), 1, %s647_s19  }
   0xe   : > { %194 = sbr.rel (%p191_p9) target bundleno = 452 (0x1c4), region = 40  ;;  %s478_s30 = sshll.u32 (!%p191_p9), %s215_s26, 3 }
   0xf   : > { %s531_s6 = sshll.u32 (!%p191_p9), %s709_s22, 3  ;;  %s400_s16 = scalar_lea.sflag (!%p191_p9), [#allocation3], %s215_s26 }
  0x13   : > { %v542_v0 = vld [vmem:[%s822_s1 + $0x38] sm:$0xff]  ;;  %v541_v2 = vld [vmem:[%s822_s1 + $0x30] sm:$0xff]  ;;  %s219_s11 = scalar_select %p218_p10, %s709_s22, 1  ;;  %v540_v4 = vld [vmem:[%s822_s1 + $0x28] sm:$0xff]  ;;  %vm328_vm0 = vcmask 523264   ;;  %vm360_vm1 = vcmask 261120  }
  0x14   : > { %v546_v1 = vld [vmem:[%s822_s1 + $0x58] sm:$0xff]  ;;  %332 = vmatpush.bf16.msra.mxu0 %v542_v0  ;;  %v545_v3 = vld [vmem:[%s822_s1 + $0x50] sm:$0xff]  ;;  %v544_v5 = vld [vmem:[%s822_s1 + $0x48] sm:$0xff]  ;;  %v657_v25 = vmov 32.0  }
  0x15   : > { %349 = vmatpush.bf16.msra.mxu1 %v546_v1  ;;  %s534_s14 = sshll.u32 %s219_s11, 3  ;;  %v539_v7 = vld [vmem:[%s822_s1 + $0x20] sm:$0xff]  ;;  %v538_v10 = vld [vmem:[%s822_s1 + $0x18] sm:$0xff]  ;;  %v537_v12 = vld [vmem:[%s822_s1 + $0x10] sm:$0xff]  ;;  %589 = vrcp.f32 %v657_v25  ;;  %s410_s11 = scalar_lea.hbm %s826_s5, %s531_s6 }
  0x16   : > { %s222_s17 = scalar_lea.vmem %s821_s0, %s534_s14  ;;  %v543_v9 = vld [vmem:[%s822_s1 + $0x40] sm:$0xff]  ;;  %v536_v13 = vld [vmem:[%s822_s1 + $0x8] sm:$0xff]  ;;  %s217_s14 = scalar_lea.vmem [#allocation2], %s478_s30 }
  0x17   : > { %v224_v6 = vld [vmem:[%s222_s17] sm:$0xff]  ;;  %s412_s22 = sshll.u32 %s217_s14, 4  ;;  %s414_s15 = sshll.u32 %s410_s11, 4  ;;  %s413_s22 = int_to_ptr.vmem [resolvable:$true] %s412_s22  ;;  %s415_s15 = int_to_ptr.hbm [resolvable:$true] %s414_s15 }
  0x18   : > { %333 = vmatpush.bf16.msra.mxu0 %v541_v2  ;;  %v252_v8 = vunpack.c.h.b16 %v224_v6  ;;  %v251_v14 = vunpack.c.l.b16 %v224_v6  ;;  %v535_v15 = vld [vmem:[%s822_s1] sm:$0xff]  ;;  %s607_s17 = sshra.s32 %s415_s15, 4  ;;  %s613_s30 = scalar_lea.hbm %s826_s5, 16  ;;  %s608_s17 = int_to_ptr.hbm [resolvable:$true] %s607_s17 }
  0x19   : > { %350 = vmatpush.bf16.msra.mxu1 %v545_v3  ;;  %v249_v19 = vld [vmem:[%s823_s2] sm:$0xff]  ;;  %s609_s23 = scalar_lea.hbm %s608_s17, 8  ;;  %p614_p0 = scmp.lt.s32.totalorder %s608_s17, %s826_s5 }
  0x1a   : > { %v254_v11 = vpack.c.b16 %v252_v8, %v252_v8  ;;  %v253_v16 = vpack.c.b16 %v251_v14, %v251_v14  ;;  %v587_v46 = vld [vmem:[%s824_s3] ss:$0 sm:$0xff]  ;;  %p610_p11 = scmp.ne.s32.totalorder %s608_s17, %s609_s23  ;;  %p615_p1 = scmp.lt.s32.totalorder %s613_s30, %s609_s23 }
  0x1b   : > { %v590_v26 = vpop.eup %589  ;;  %v588_v49 = vld [vmem:[%s825_s4] ss:$0 sm:$0xff] }
  0x1c   : > { %334 = vmatpush.bf16.msra.mxu0 %v540_v4  ;;  %v365_v27 = vmul.f32 32.0, %v590_v26  ;;  %vm369_vm2 = vweird.f32 %v590_v26  ;;  %p611_p12 = pnand %p610_p11, %p726_p5  ;;  %p616_p2 = por %p615_p1, %p614_p0 }
  0x1d   : > { %351 = vmatpush.bf16.msra.mxu1 %v544_v5 }
  0x1e   : > { %v366_v28 = vsub.f32 1.0, %v365_v27  ;;  %p612_p13 = pneg %p611_p12 }
  0x20   : > { %335 = vmatpush.bf16.msra.mxu0 %v539_v7  ;;  %v367_v29 = vmul.f32 %v590_v26, %v366_v28  ;;  %p617_p3 = pnand %p616_p2, %p612_p13 }
  0x21   : > { %352 = vmatpush.bf16.msra.mxu1 %v543_v9 }
  0x22   : > { %v368_v30 = vadd.f32 %v590_v26, %v367_v29 }
  0x24   : > { %336 = vmatpush.bf16.msra.mxu0 %v538_v10  ;;  %529 = vmatmul.msk.bf16.vlgmr.msra.gmra.mxu1 %vm328_vm0, %v254_v11  ;;  %v370_v31 = vsel %vm369_vm2, %v590_v26, %v368_v30 }
  0x28   : > { %337 = vmatpush.bf16.msra.mxu0 %v537_v12 }
  0x2c   : > { %338 = vmatpush.bf16.msra.mxu0 %v536_v13 }
  0x30   : > { %339 = vmatpush.bf16.msra.mxu0 %v535_v15 }
  0x33   : > { %340 = vmatmul.bf16.vlgmr.msra.gmra.mxu0 %v253_v16 }
  0xa1   : > { %v354_v17 = vpop.f32.mrf.mxu1 }
  0xa9   : > { %v356_v18 = vpop.f32.mrf.mxu1 }
  0xb0   : > { %v341_v20 = vpop.f32.mrf.mxu0 }
  0xb1   : > { %v342_v21 = vadd.f32 %v341_v20, %v249_v19 }
  0xb3   : > { %v355_v22 = vadd.f32 %v354_v17, %v342_v21 }
  0xb5   : > { %v361_v23 = vsel %vm360_vm1, %v355_v22, 0.0 }
  0xb6   : > { %362 = vadd.xlane.f32.xlu0 %v361_v23 }
  0xb8   : > { %v343_v24 = vpop.f32.mrf.mxu0 }
 0x129   : > { %v363_v32 = vpop.xlane.xlu0 %362 }
 0x12a   : > { %v371_v33 = vmul.f32 %v370_v31, %v363_v32 }
 0x12c   : > { %v372_v34 = vsub.f32 %v355_v22, %v371_v33 }
 0x12e   : > { %v373_v35 = vmul.f32 %v372_v34, %v372_v34 }
 0x130   : > { %v374_v36 = vsel %vm360_vm1, %v373_v35, 0.0 }
 0x131   : > { %375 = vadd.xlane.f32.xlu0 %v374_v36 }
 0x1a4   : > { %v376_v37 = vpop.xlane.xlu0 %375 }
 0x1a5   : > { %v377_v38 = vmul.f32 %v376_v37, %v370_v31 }
 0x1a7   : > { %v378_v39 = vadd.f32 1e-05, %v377_v38 }
 0x1a9   : > { %591 = vrsqrt.f32 %v378_v39  ;;  %vm385_vm4 = vweird.f32 %v378_v39 }
 0x1af   : > { %v592_v40 = vpop.eup %591 }
 0x1b0   : > { %v380_v41 = vmul.f32 %v592_v40, %v378_v39  ;;  %vm386_vm3 = vweird.f32 %v592_v40 }
 0x1b1   : > { %vm387_vm5 = vmor %vm385_vm4, %vm386_vm3 }
 0x1b2   : > { %v381_v42 = vmul.f32 %v592_v40, %v380_v41 }
 0x1b4   : > { %v382_v43 = vmul.f32 0.5, %v381_v42 }
 0x1b6   : > { %v383_v44 = vsub.f32 1.5, %v382_v43 }
 0x1b8   : > { %v384_v45 = vmul.f32 %v592_v40, %v383_v44 }
 0x1ba   : > { %v388_v47 = vsel %vm387_vm5, %v592_v40, %v384_v45 }
 0x1bb   : > { %v389_v48 = vmul.f32 %v388_v47, %v372_v34 }
 0x1bd   : > { %v393_v50 = vmul.f32 %v587_v46, %v389_v48 }
 0x1bf   : > { %v397_v51 = vadd.f32 %v588_v49, %v393_v50 }
 0x1c1   : > { %398 = vst.msk [vmem:[%s217_s14] sm:$0xff] %vm360_vm1, %v397_v51 }
 0x1c2   : > { %620 = shalt.err (!%p617_p3)
}
 0x1c3   : > { %547 = dma.vmem_to_hbm [thread:$0]  (%p726_p5), %s413_s22, 128, %s415_s15, %s400_s16  }
 0x1c4 PF: > { %p553_p4 = scmp.ge.s32.totalorder %s655_s21, 2  ;;  %s426_s26 = sand.u32 1, %s643_s18  }
 0x1c5   : > { %s427_s9 = scalar_lea.sflag [#allocation3], %s426_s26 }
 0x1c6   : > { %p550_p7 = pnand %p553_p4, %p730_p6 }
 0x1c8   : > { %p551_p8 = pneg %p550_p7 }
 0x1ca   : > { %638 = dma.done.wait (%p551_p8), %s427_s9, 128  }
 0x1cb   : > { %640 = vsyncadd (%p551_p8), %s427_s9, 4294967168  ;;  %p15_p9 = scmp.ge.s32.totalorder %s713_s24, 4   ;;  %s829_s18 = smov %s647_s19 }
 0x1cc   : > { %s830_s19 = smov %s651_s20  ;;  %s831_s20 = smov %s724_s27 }
 0x1cd   : > { %s832_s21 = smov %s713_s24  ;;  %17 = sbr.rel (!%p15_p9) target bundleno = 3 (0x3), region = 75 }
 0x1d2   :  { %433 = vsyncpa [#allocation3], 1 }
 0x1d3   :  { %435 = vsyncpa [#allocation3 + $0x1], 1 }

</bundles_post_ra>
